<compile_context>
chip_gen: v6e
topology: v6e:2x2x1
jax: 0.10.0
libtpu: 0.0.40
codegen_flags: <defaults>
</compile_context>

<pallas_src>
import functools

import jax
import jax.numpy as jnp
from jax import lax
from jax.experimental import pallas as pl
from jax.experimental.pallas import tpu as pltpu

LEAKY_SLOPE = 0.01  # PyTorch F.leaky_relu default negative_slope


def _conv_lrelu_kernel(w_ref, x_ref, o_ref, *, t_block, hw, unroll):
    # w_ref: (3, C_out, C_in)          tap-major weights, resident across grid
    # o_ref: (1, C_out, t_block*hw)
    # x_ref: (1, C_in, 3*t_block*hw)   input slab for t_block output timesteps
    w0 = w_ref[0]                      # (C_out, C_in)
    w1 = w_ref[1]
    w2 = w_ref[2]

    def body(t, carry):
        # hw is a multiple of 128, so all starts are 128-lane aligned.
        b0 = pl.multiple_of(3 * t * hw, 128)
        b1 = pl.multiple_of(3 * t * hw + hw, 128)
        b2 = pl.multiple_of(3 * t * hw + 2 * hw, 128)
        x0 = x_ref[0, :, pl.ds(b0, hw)]            # (C_in, hw) tap 0
        x1 = x_ref[0, :, pl.ds(b1, hw)]            # tap 1
        x2 = x_ref[0, :, pl.ds(b2, hw)]            # tap 2
        # TODO(synk): if compute ever becomes exposed (large C_in/C_out, tiny
        # HW), fuse the 3 taps into a single K=3*C_in matmul -- only if the
        # (3*C_in, hw) view lowers without a VMEM relayout copy.
        acc = jnp.dot(w0, x0, preferred_element_type=jnp.float32)
        acc = acc + jnp.dot(w1, x1, preferred_element_type=jnp.float32)
        acc = acc + jnp.dot(w2, x2, preferred_element_type=jnp.float32)
        y = jnp.where(acc > 0, acc, LEAKY_SLOPE * acc)          # leaky_relu
        o_start = pl.multiple_of(t * hw, 128)
        o_ref[0, :, pl.ds(o_start, hw)] = y.astype(o_ref.dtype)
        return carry

    lax.fori_loop(0, t_block, body, 0, unroll=unroll)


def _round_up(v, m):
    return (v + m - 1) // m * m


def _vmem_capacity_bytes():
    try:
        return int(pltpu.get_tpu_info().vmem_capacity_bytes)
    except Exception:
        return 128 * 1024 * 1024  # v5e/v6e default if the query is unavailable


def _pick_t_block(n, t_out, c_in_pad, c_out_pad, hw, itemsize, max_block_bytes):
    """Largest divisor of t_out whose (sublane-padded) blocks fit the budget,
    with a preference for an even (>=8 when cheap) total block count."""

    def in_bytes(tb):
        return c_in_pad * 3 * tb * hw * itemsize

    def out_bytes(tb):
        return c_out_pad * tb * hw * itemsize

    def blocks(tb):
        return n * (t_out // tb)

    fitting = [tb for tb in range(1, t_out + 1)
               if t_out % tb == 0
               and in_bytes(tb) <= max_block_bytes
               and out_bytes(tb) <= max_block_bytes]
    if not fitting:
        return 1
    best = max(fitting)
    # v7x has 2 TensorCores: prefer an even block count >= 8 as long as it
    # keeps the input block within 4x of the largest fitting block.
    cands = [tb for tb in fitting
             if blocks(tb) % 2 == 0 and blocks(tb) >= 8
             and in_bytes(tb) * 4 >= in_bytes(best)]
    if cands:
        return max(cands)
    # Otherwise at least an even count >= 2 so both cores get work.
    cands = [tb for tb in fitting if blocks(tb) % 2 == 0 and blocks(tb) >= 2]
    if cands:
        return max(cands)
    return best


def localtemporal_ag(x, weight):
    """x: (N, C_in, T, H, W);  weight: (C_out, C_in, 3, 1, 1).

    Returns leaky_relu(Conv3d(x; kernel=(3,1,1), stride=(3,1,1), no bias)).
    """
    N, C_in, T, H, W = x.shape
    C_out = weight.shape[0]
    assert T % 3 == 0, "stride-3 no-padding conv requires T divisible by 3"
    T_out = T // 3
    HW = H * W
    # TODO(synk): pad / fuse T if H*W is not lane-dense (non multiple of 128).
    assert HW % 128 == 0, "demo assumes H*W is a multiple of 128"

    itemsize = jnp.dtype(x.dtype).itemsize
    sublane = max(8, 32 // itemsize)          # 8 rows f32 / 16 bf16 / 32 int8
    c_in_pad = _round_up(C_in, sublane)
    c_out_pad = _round_up(C_out, sublane)

    # Generation-aware budgets (v5e/v6e: 128 MiB VMEM, v7x: 64 MiB).
    vmem_cap = _vmem_capacity_bytes()
    big_vmem = vmem_cap >= 100 * 1024 * 1024
    max_block_bytes = (16 if big_vmem else 8) * 1024 * 1024
    vmem_ceiling = (96 if big_vmem else 42) * 1024 * 1024

    Tb = _pick_t_block(N, T_out, c_in_pad, c_out_pad, HW, itemsize, max_block_bytes)
    grid = (N, T_out // Tb)

    # Free reshapes only — no HBM transpose of the activations.
    x3 = x.reshape(N, C_in, T * HW)
    # Tap-major weight (tiny tensor; transpose cost negligible).
    w3 = jnp.transpose(weight.reshape(C_out, C_in, 3), (2, 0, 1))  # (3, C_out, C_in)

    x_blk = 3 * Tb * HW
    o_blk = Tb * HW

    unroll = max(1, min(4, Tb))
    kernel = functools.partial(_conv_lrelu_kernel, t_block=Tb, hw=HW, unroll=unroll)

    # VMEM request: double-buffered input + output blocks (with sublane
    # padding) plus the resident, (sublane x 128)-padded weights; 1.5x slack.
    w_itemsize = jnp.dtype(w3.dtype).itemsize
    w_sublane = max(8, 32 // w_itemsize)
    w_bytes = 3 * _round_up(C_out, w_sublane) * _round_up(C_in, 128) * w_itemsize
    in_blk_bytes = c_in_pad * x_blk * itemsize
    out_blk_bytes = c_out_pad * o_blk * itemsize
    need = 2 * (in_blk_bytes + out_blk_bytes) + w_bytes
    vmem_limit = int(min(max(need + need // 2, 16 * 1024 * 1024), vmem_ceiling))

    out = pl.pallas_call(
        kernel,
        out_shape=jax.ShapeDtypeStruct((N, C_out, T_out * HW), x.dtype),
        grid=grid,
        in_specs=[
            pl.BlockSpec((3, C_out, C_in), lambda n, t: (0, 0, 0)),   # weights resident
            pl.BlockSpec((1, C_in, x_blk), lambda n, t: (n, 0, t)),   # input slab
        ],
        out_specs=pl.BlockSpec((1, C_out, o_blk), lambda n, t: (n, 0, t)),
        compiler_params=pltpu.CompilerParams(
            dimension_semantics=("parallel", "parallel"),
            vmem_limit_bytes=vmem_limit,
        ),
    )(w3, x3)

    # Free reshape back to (N, C_out, T_out, H, W) — no transpose needed.
    return out.reshape(N, C_out, T_out, H, W)


def _reference(x, weight):
    # pure-JAX reference: Conv3d((3,1,1), stride (3,1,1), no pad, no bias) + leaky_relu
    N, C_in, T, H, W = x.shape
    C_out = weight.shape[0]
    T_out = T // 3
    x_r = x.reshape(N, C_in, T_out, 3, H, W)
    w_r = weight.reshape(C_out, C_in, 3)
    y = jnp.einsum("ncokhw,dck->ndohw", x_r, w_r)
    return jnp.where(y > 0, y, LEAKY_SLOPE * y)


if __name__ == "__main__":
    key = jax.random.PRNGKey(0)
    k_x, k_w = jax.random.split(key)

    # small shapes consistent with the module: N=2, C_in=4, C_out=8, T=6, H=W=16
    N, C_in, C_out, T, H, W = 2, 4, 8, 6, 16, 16

    x = jax.random.normal(k_x, (N, C_in, T, H, W), dtype=jnp.float32)
    fan_in = C_in * 3
    bound = 1.0 / jnp.sqrt(fan_in)
    weight = jax.random.uniform(
        k_w, (C_out, C_in, 3, 1, 1), minval=-bound, maxval=bound, dtype=jnp.float32
    )

    out = localtemporal_ag(x, weight)
    out = jax.block_until_ready(out)

    ref = _reference(x, weight)
    assert out.shape == (N, C_out, T // 3, H, W), out.shape
    assert jnp.allclose(out, ref, atol=1e-5, rtol=1e-5), "mismatch vs reference"

    print("KERNEL_OK")
</pallas_src>

<mosaic_0001>
module attributes {stable_mosaic.version = 11 : i64} {
  func.func @_conv_lrelu_kernel(%arg0: i32, %arg1: i32, %arg2: memref<3x8x4xf32, #tpu.memory_space<vmem>>, %arg3: memref<1x4x1536xf32, #tpu.memory_space<vmem>>, %arg4: memref<1x8x512xf32, #tpu.memory_space<vmem>>) attributes {dimension_semantics = [#tpu.dimension_semantics<parallel>, #tpu.dimension_semantics<parallel>], iteration_bounds = array<i64: 2, 1>, scalar_prefetch = 0 : i64, scratch_operands = 0 : i64, tpu.core_type = #tpu.core_type<tc>, window_params = [{pipeline_mode = #tpu.pipeline_mode<synchronous>, transform_indices = @transform_0, window_bounds = array<i64: 3, 8, 4>}, {transform_indices = @transform_1, window_bounds = array<i64: 1, 4, 1536>}, {transform_indices = @transform_2, window_bounds = array<i64: 1, 8, 512>}]} {
    %c0 = arith.constant 0 : index
    %c0_0 = arith.constant 0 : index
    %c0_1 = arith.constant 0 : index
    %0 = vector.load %arg2[%c0, %c0_0, %c0_1] : memref<3x8x4xf32, #tpu.memory_space<vmem>>, vector<1x8x4xf32>
    %1 = vector.shape_cast %0 : vector<1x8x4xf32> to vector<8x4xf32>
    %c1 = arith.constant 1 : index
    %c0_2 = arith.constant 0 : index
    %c0_3 = arith.constant 0 : index
    %2 = vector.load %arg2[%c1, %c0_2, %c0_3] : memref<3x8x4xf32, #tpu.memory_space<vmem>>, vector<1x8x4xf32>
    %3 = vector.shape_cast %2 : vector<1x8x4xf32> to vector<8x4xf32>
    %c2 = arith.constant 2 : index
    %c0_4 = arith.constant 0 : index
    %c0_5 = arith.constant 0 : index
    %4 = vector.load %arg2[%c2, %c0_4, %c0_5] : memref<3x8x4xf32, #tpu.memory_space<vmem>>, vector<1x8x4xf32>
    %5 = vector.shape_cast %4 : vector<1x8x4xf32> to vector<8x4xf32>
    %c0_i32 = arith.constant 0 : i32
    %c3_i32 = arith.constant 3 : i32
    %6 = arith.muli %c3_i32, %c0_i32 : i32
    %c256_i32 = arith.constant 256 : i32
    %7 = arith.muli %6, %c256_i32 : i32
    %8 = tpu.assume_multiple %7, 128 : i32
    %c3_i32_6 = arith.constant 3 : i32
    %9 = arith.muli %c3_i32_6, %c0_i32 : i32
    %c256_i32_7 = arith.constant 256 : i32
    %10 = arith.muli %9, %c256_i32_7 : i32
    %c256_i32_8 = arith.constant 256 : i32
    %11 = arith.addi %10, %c256_i32_8 : i32
    %12 = tpu.assume_multiple %11, 128 : i32
    %c3_i32_9 = arith.constant 3 : i32
    %13 = arith.muli %c3_i32_9, %c0_i32 : i32
    %c256_i32_10 = arith.constant 256 : i32
    %14 = arith.muli %13, %c256_i32_10 : i32
    %c512_i32 = arith.constant 512 : i32
    %15 = arith.addi %14, %c512_i32 : i32
    %16 = tpu.assume_multiple %15, 128 : i32
    %c0_11 = arith.constant 0 : index
    %c0_12 = arith.constant 0 : index
    %17 = arith.index_cast %8 : i32 to index
    %18 = vector.load %arg3[%c0_11, %c0_12, %17] : memref<1x4x1536xf32, #tpu.memory_space<vmem>>, vector<1x4x256xf32>
    %19 = vector.shape_cast %18 : vector<1x4x256xf32> to vector<4x256xf32>
    %c0_13 = arith.constant 0 : index
    %c0_14 = arith.constant 0 : index
    %20 = arith.index_cast %12 : i32 to index
    %21 = vector.load %arg3[%c0_13, %c0_14, %20] : memref<1x4x1536xf32, #tpu.memory_space<vmem>>, vector<1x4x256xf32>
    %22 = vector.shape_cast %21 : vector<1x4x256xf32> to vector<4x256xf32>
    %c0_15 = arith.constant 0 : index
    %c0_16 = arith.constant 0 : index
    %23 = arith.index_cast %16 : i32 to index
    %24 = vector.load %arg3[%c0_15, %c0_16, %23] : memref<1x4x1536xf32, #tpu.memory_space<vmem>>, vector<1x4x256xf32>
    %25 = vector.shape_cast %24 : vector<1x4x256xf32> to vector<4x256xf32>
    %cst = arith.constant dense<0.000000e+00> : vector<8x256xf32>
    %26 = tpu.matmul %1, %19, %cst {dimension_numbers = #tpu.dot_dimension_numbers<[1], [0], [0], [1], [0, 0, 1, 1], [], []>} : vector<8x4xf32>, vector<4x256xf32>, vector<8x256xf32> -> vector<8x256xf32>
    %cst_17 = arith.constant dense<0.000000e+00> : vector<8x256xf32>
    %27 = tpu.matmul %3, %22, %cst_17 {dimension_numbers = #tpu.dot_dimension_numbers<[1], [0], [0], [1], [0, 0, 1, 1], [], []>} : vector<8x4xf32>, vector<4x256xf32>, vector<8x256xf32> -> vector<8x256xf32>
    %28 = arith.addf %26, %27 : vector<8x256xf32>
    %cst_18 = arith.constant dense<0.000000e+00> : vector<8x256xf32>
    %29 = tpu.matmul %5, %25, %cst_18 {dimension_numbers = #tpu.dot_dimension_numbers<[1], [0], [0], [1], [0, 0, 1, 1], [], []>} : vector<8x4xf32>, vector<4x256xf32>, vector<8x256xf32> -> vector<8x256xf32>
    %30 = arith.addf %28, %29 : vector<8x256xf32>
    %cst_19 = arith.constant 0.000000e+00 : f32
    %31 = vector.broadcast %cst_19 : f32 to vector<8x256xf32>
    %32 = arith.cmpf ogt, %30, %31 : vector<8x256xf32>
    %cst_20 = arith.constant 0.00999999977 : f32
    %33 = vector.broadcast %cst_20 : f32 to vector<8x256xf32>
    %34 = arith.mulf %33, %30 : vector<8x256xf32>
    %35 = arith.select %32, %30, %34 : vector<8x256xi1>, vector<8x256xf32>
    %c256_i32_21 = arith.constant 256 : i32
    %36 = arith.muli %c0_i32, %c256_i32_21 : i32
    %37 = tpu.assume_multiple %36, 128 : i32
    %c0_22 = arith.constant 0 : index
    %c0_23 = arith.constant 0 : index
    %38 = arith.index_cast %37 : i32 to index
    %39 = vector.load %arg4[%c0_22, %c0_23, %38] : memref<1x8x512xf32, #tpu.memory_space<vmem>>, vector<1x8x256xf32>
    %40 = vector.shape_cast %39 : vector<1x8x256xf32> to vector<8x256xf32>
    %41 = vector.shape_cast %35 : vector<8x256xf32> to vector<1x8x256xf32>
    tpu.vector_store %arg4[%c0_22, %c0_23, %38], %41 {strides = array<i32>} : memref<1x8x512xf32, #tpu.memory_space<vmem>>, vector<1x8x256xf32>,
    %c1_i32 = arith.constant 1 : i32
    %c3_i32_24 = arith.constant 3 : i32
    %42 = arith.muli %c3_i32_24, %c1_i32 : i32
    %c256_i32_25 = arith.constant 256 : i32
    %43 = arith.muli %42, %c256_i32_25 : i32
    %44 = tpu.assume_multiple %43, 128 : i32
    %c3_i32_26 = arith.constant 3 : i32
    %45 = arith.muli %c3_i32_26, %c1_i32 : i32
    %c256_i32_27 = arith.constant 256 : i32
    %46 = arith.muli %45, %c256_i32_27 : i32
    %c256_i32_28 = arith.constant 256 : i32
    %47 = arith.addi %46, %c256_i32_28 : i32
    %48 = tpu.assume_multiple %47, 128 : i32
    %c3_i32_29 = arith.constant 3 : i32
    %49 = arith.muli %c3_i32_29, %c1_i32 : i32
    %c256_i32_30 = arith.constant 256 : i32
    %50 = arith.muli %49, %c256_i32_30 : i32
    %c512_i32_31 = arith.constant 512 : i32
    %51 = arith.addi %50, %c512_i32_31 : i32
    %52 = tpu.assume_multiple %51, 128 : i32
    %c0_32 = arith.constant 0 : index
    %c0_33 = arith.constant 0 : index
    %53 = arith.index_cast %44 : i32 to index
    %54 = vector.load %arg3[%c0_32, %c0_33, %53] : memref<1x4x1536xf32, #tpu.memory_space<vmem>>, vector<1x4x256xf32>
    %55 = vector.shape_cast %54 : vector<1x4x256xf32> to vector<4x256xf32>
    %c0_34 = arith.constant 0 : index
    %c0_35 = arith.constant 0 : index
    %56 = arith.index_cast %48 : i32 to index
    %57 = vector.load %arg3[%c0_34, %c0_35, %56] : memref<1x4x1536xf32, #tpu.memory_space<vmem>>, vector<1x4x256xf32>
    %58 = vector.shape_cast %57 : vector<1x4x256xf32> to vector<4x256xf32>
    %c0_36 = arith.constant 0 : index
    %c0_37 = arith.constant 0 : index
    %59 = arith.index_cast %52 : i32 to index
    %60 = vector.load %arg3[%c0_36, %c0_37, %59] : memref<1x4x1536xf32, #tpu.memory_space<vmem>>, vector<1x4x256xf32>
    %61 = vector.shape_cast %60 : vector<1x4x256xf32> to vector<4x256xf32>
    %cst_38 = arith.constant dense<0.000000e+00> : vector<8x256xf32>
    %62 = tpu.matmul %1, %55, %cst_38 {dimension_numbers = #tpu.dot_dimension_numbers<[1], [0], [0], [1], [0, 0, 1, 1], [], []>} : vector<8x4xf32>, vector<4x256xf32>, vector<8x256xf32> -> vector<8x256xf32>
    %cst_39 = arith.constant dense<0.000000e+00> : vector<8x256xf32>
    %63 = tpu.matmul %3, %58, %cst_39 {dimension_numbers = #tpu.dot_dimension_numbers<[1], [0], [0], [1], [0, 0, 1, 1], [], []>} : vector<8x4xf32>, vector<4x256xf32>, vector<8x256xf32> -> vector<8x256xf32>
    %64 = arith.addf %62, %63 : vector<8x256xf32>
    %cst_40 = arith.constant dense<0.000000e+00> : vector<8x256xf32>
    %65 = tpu.matmul %5, %61, %cst_40 {dimension_numbers = #tpu.dot_dimension_numbers<[1], [0], [0], [1], [0, 0, 1, 1], [], []>} : vector<8x4xf32>, vector<4x256xf32>, vector<8x256xf32> -> vector<8x256xf32>
    %66 = arith.addf %64, %65 : vector<8x256xf32>
    %cst_41 = arith.constant 0.000000e+00 : f32
    %67 = vector.broadcast %cst_41 : f32 to vector<8x256xf32>
    %68 = arith.cmpf ogt, %66, %67 : vector<8x256xf32>
    %cst_42 = arith.constant 0.00999999977 : f32
    %69 = vector.broadcast %cst_42 : f32 to vector<8x256xf32>
    %70 = arith.mulf %69, %66 : vector<8x256xf32>
    %71 = arith.select %68, %66, %70 : vector<8x256xi1>, vector<8x256xf32>
    %c256_i32_43 = arith.constant 256 : i32
    %72 = arith.muli %c1_i32, %c256_i32_43 : i32
    %73 = tpu.assume_multiple %72, 128 : i32
    %c0_44 = arith.constant 0 : index
    %c0_45 = arith.constant 0 : index
    %74 = arith.index_cast %73 : i32 to index
    %75 = vector.load %arg4[%c0_44, %c0_45, %74] : memref<1x8x512xf32, #tpu.memory_space<vmem>>, vector<1x8x256xf32>
    %76 = vector.shape_cast %75 : vector<1x8x256xf32> to vector<8x256xf32>
    %77 = vector.shape_cast %71 : vector<8x256xf32> to vector<1x8x256xf32>
    tpu.vector_store %arg4[%c0_44, %c0_45, %74], %77 {strides = array<i32>} : memref<1x8x512xf32, #tpu.memory_space<vmem>>, vector<1x8x256xf32>,
    %c2_i32 = arith.constant 2 : i32
    return
  }
  func.func @transform_0(%arg0: i32, %arg1: i32) -> (i32, i32, i32) {
    %c0_i32 = arith.constant 0 : i32
    %c0_i32_0 = arith.constant 0 : i32
    %c0_i32_1 = arith.constant 0 : i32
    %c0_i32_2 = arith.constant 0 : i32
    return %c0_i32, %c0_i32_0, %c0_i32_1 : i32, i32, i32
  }
  func.func @transform_1(%arg0: i32, %arg1: i32) -> (i32, i32, i32) {
    %c0_i32 = arith.constant 0 : i32
    %c0_i32_0 = arith.constant 0 : i32
    return %arg0, %c0_i32, %arg1 : i32, i32, i32
  }
  func.func @transform_2(%arg0: i32, %arg1: i32) -> (i32, i32, i32) {
    %c0_i32 = arith.constant 0 : i32
    %c0_i32_0 = arith.constant 0 : i32
    return %arg0, %c0_i32, %arg1 : i32, i32, i32
  }
}

</mosaic_0001>

<bundles_post_ra>
// kernel: tpu_custom_call.1
= control target key start
LH: loop header
LB: loop body
LE: loop exit
PB: predicated region body
PF: predicated region fallthrough
CT: control target
= control target key end

     0   :  { %7 = vsyncpa [#allocation3], 0  ;;  %s1197_s0 = inlined_call_operand.vmem [shape: f32[3,8,4], index: 0, kind: input, shape index: {}]   ;;  %s1198_s1 = inlined_call_operand.hbm [shape: f32[2,4,1536], index: 1, kind: input, shape index: {}]   ;;  %s1199_s2 = inlined_call_operand.hbm [shape: f32[2,8,512], index: 2, kind: output, shape index: {}]  }
   0x1   :  { %9 = vsyncpa [#allocation3 + $0x1], 0 }
   0x2   :  { %10 = vsyncpa [#allocation4], 0 }
   0x3   :  { %12 = vsyncpa [#allocation4 + $0x1], 0  ;;  %s1031_s9 = smov 0   ;;  %s1033_s10 = smov 0  }
   0x4   :  { %s1035_s11 = smov 0   ;;  %s1037_s12 = smov 0  }
   0x5   :  { %s1039_s13 = smov 0   ;;  %s1041_s14 = smov 0  }
   0x6 LB: > { %s791_s15 = sadd.s32 4294967295, %s1011_s14   ;;  %s792_s16 = sadd.s32 4294967294, %s1011_s14   ;;  %s1011_s14 = sphi %s1041_s14, %s18_s14   ;;  %s1007_s13 = sphi %s1039_s13, %s1211_s13   ;;  %s1003_s12 = sphi %s1037_s12, %s1210_s12   ;;  %s999_s11 = sphi %s1035_s11, %s1209_s11   ;;  %s995_s10 = sphi %s1033_s10, %s1208_s10   ;;  %s991_s9 = sphi %s1031_s9, %s1207_s9  }
   0x7   : > { %s30_s17 = sadd.s32 1, %s1007_s13  ;;  %s60_s18 = sadd.s32 1, %s999_s11 }
   0x8   : > { %p32_p0 = scmp.ge.s32.totalorder %s30_s17, 2  ;;  %p67_p1 = scmp.ne.s32.totalorder %s999_s11, %s995_s10 }
   0x9   : > { %p68_p2 = scmp.eq.s32.totalorder %s1011_s14, 0  ;;  %p73_p3 = scmp.ne.s32.totalorder %s995_s10, %s991_s9 }
   0xa   : > { %s1213_s17 = smov (%p32_p0, %s30_s17), 0  ;;  %p74_p5 = scmp.eq.s32.totalorder %s791_s15, 0 }
   0xb   : > { %p1072_p4 = por %p68_p2, %p67_p1  ;;  %s55_s20 = ssub.s32 %s1007_s13, %s1213_s17 }
   0xc   : > { %p99_p6 = scmp.eq.s32.totalorder %s791_s15, 1  ;;  %p58_p7 = scmp.eq.s32.totalorder %s55_s20, 0 }
   0xd   : > { %p1078_p8 = por %p74_p5, %p73_p3  ;;  %p105_p10 = scmp.eq.s32.totalorder %s792_s16, 1 }
   0xe   : > { %p1082_p9 = por %p99_p6, %p67_p1  ;;  %p846_p13 = scmp.lt.s32.totalorder %s1011_s14, 2 }
   0xf   : > { %s1087_s23 = scalar_select %p58_p7, %s999_s11, %s60_s18  }
  0x10   : > { %p1089_p11 = por %p105_p10, %p73_p3  ;;  %s128_s25 = sand.u32 1, %s999_s11  }
  0x11   : > { %s831_s26 = smul.u32 48, %s128_s25  ;;  %p1099_p0 = pnand %p846_p13, %p1072_p4 }
  0x12   : > { %s1203_s24 = scalar_select %p1089_p11, 1, 0 }
  0x13   : > { %s832_s27 = smul.u32 768, %s1007_s13  ;;  %p796_p1 = scmp.ge.s32.totalorder %s1011_s14, 1 }
  0x14   : > { %s132_s4 = scalar_lea.vmem [#allocation2], %s831_s26  ;;  %s129_s6 = scalar_lea.sflag [#allocation3], %s128_s25 }
  0x15   : > { %s140_s3 = scalar_lea.hbm %s1198_s1, %s832_s27  ;;  %s142_s5 = sshll.u32 %s132_s4, 4  ;;  %s143_s5 = int_to_ptr.vmem [resolvable:$true] %s142_s5 }
  0x16   : > { %p905_p2 = pneg %p1099_p0  ;;  %s916_s7 = scalar_lea.vmem %s143_s5, 768 }
  0x17   : > { %p917_p3 = scmp.ne.s32.totalorder %s143_s5, %s916_s7  ;;  %s1013_s8 = smov [#allocation2]  }
  0x18   : > { %s921_s15 = sshll.u32 %s1013_s8, 4  ;;  %s922_s15 = int_to_ptr.vmem [resolvable:$false] %s921_s15 }
  0x19   : > { %p919_p5 = pnand %p917_p3, %p905_p2  ;;  %s923_s16 = scalar_lea.vmem %s922_s15, 1536 }
  0x1a   : > { %p924_p4 = scmp.lt.s32.totalorder %s143_s5, %s922_s15  ;;  %p925_p7 = scmp.lt.s32.totalorder %s923_s16, %s916_s7 }
  0x1b   : > { %p920_p6 = pneg %p919_p5 }
  0x1c   : > { %p926_p10 = por %p925_p7, %p924_p4 }
  0x1e   : > { %p927_p13 = pnand %p926_p10, %p920_p6 }
  0x20   : > { %930 = shalt.err (!%p927_p13)
}
  0x21   : > { %841 = dma.hbm_to_vmem [thread:$0]  (!%p1099_p0), %s140_s3, 768, %s143_s5, %s129_s6  }
  0x22   : > { %p147_p12 = scmp.lt.s32.totalorder %s1011_s14, 3 }
  0x24   : > { %p148_p11 = pnand %p796_p1, %p147_p12 }
  0x25   : > { %s1115_s18 = sand.u32 (!%p148_p11), 1, %s995_s10  }
  0x26   : > { %151 = sbr.rel (%p148_p11) target bundleno = 272 (0x110), region = 28  ;;  %s154_s20 = scalar_lea.sflag (!%p148_p11), [#allocation3], %s1115_s18 }
  0x27   : > { %s833_s19 = smul.u32 (!%p148_p11), 48, %s1115_s18 }
  0x29   : > { %s157_s25 = scalar_lea.vmem (!%p148_p11), [#allocation2], %s833_s19 }
  0x2b   : > { %982 = dma.done.wait (%p1078_p8), %s154_s20, 768  }
  0x2c   : > { %984 = vsyncadd (%p1078_p8), %s154_s20, 4294966528  ;;  %v1014_v0 = vmov 0.0   ;;  %v800_v1 = vld [vmem:[%s157_s25 + $0x8] sm:$0xff]  ;;  %vm196_vm0 = vcmask 1043456   ;;  %v185_v2 = vld [vmem:[%s157_s25] sm:$0xff]  ;;  %vm192_vm1 = vcmask 31744  }
  0x2d   : > { %265 = vmatprep.mubr.f32.mxu0 %v1014_v0  ;;  %345 = vmatprep.mubr.f32.mxu1 %v1014_v0  ;;  %v191_v3 = vcombine.high %v800_v1, %v800_v1  ;;  %v273_v4 = vcombine.high %v185_v2, %v185_v2  ;;  %v801_v5 = vld [vmem:[%s157_s25 + $0x10] sm:$0xff]  ;;  %v812_v6 = vld [vmem:[%s157_s25 + $0x20] sm:$0xff]  ;;  %v798_v7 = vld [vmem:[%s1197_s0 + $0x8] sm:$0xff]  ;;  %s797_s3 = sshll.u32 %s1115_s18, 5  ;;  %s830_s5 = sshll.u32 %s1003_s12, 9 }
  0x2e   : > { %v180_v8 = vld [vmem:[%s1197_s0] sm:$0xff]  ;;  %v353_v9 = vcombine.high %v801_v5, %v801_v5  ;;  %v449_v10 = vcombine.high %v812_v6, %v812_v6  ;;  %v811_v11 = vld [vmem:[%s157_s25 + $0x18] sm:$0xff]  ;;  %v813_v12 = vld [vmem:[%s157_s25 + $0x28] sm:$0xff]  ;;  %s177_s4 = scalar_lea.vmem [#allocation5], %s797_s3  ;;  %s1155_s15 = scalar_lea.hbm %s1199_s2, %s830_s5 }
  0x2f   : > { %802 = vmatprep.subr.msk.mxu0 %vm196_vm0, %v191_v3  ;;  %805 = vmatprep.subr.msk.mxu1 %vm196_vm0, %v273_v4  ;;  %v526_v13 = vcombine.high %v811_v11, %v811_v11  ;;  %v799_v14 = vld [vmem:[%s1197_s0 + $0x10] sm:$0xff]  ;;  %v603_v15 = vcombine.high %v813_v12, %v813_v12  ;;  %s707_s6 = sshll.u32 %s177_s4, 4  ;;  %s691_s16 = scalar_lea.sflag [#allocation4], %s1115_s18  ;;  %s708_s6 = int_to_ptr.vmem [resolvable:$true] %s707_s6 }
  0x30   : > { %803 = vmatpush1.msk.msra.mxu0 %vm196_vm0, %v800_v1  ;;  %806 = vmatpush1.msk.msra.mxu1 %vm196_vm0, %v185_v2  ;;  %s931_s19 = scalar_lea.vmem %s708_s6, 512  ;;  %s1015_s12 = smov [#allocation5]  }
  0x31   : > { %804 = vmatmul.mubr.msk.f32.vlgmr.msra.gmra.mxu0 %vm192_vm1, %v798_v7  ;;  %807 = vmatmul.mubr.msk.f32.vlgmr.msra.gmra.mxu1 %vm192_vm1, %v180_v8  ;;  %p932_p8 = scmp.ne.s32.totalorder %s708_s6, %s931_s19  ;;  %s935_s20 = sshll.u32 %s1015_s12, 4  ;;  %s936_s20 = int_to_ptr.vmem [resolvable:$false] %s935_s20 }
  0x32   : > { %808 = vmatprep.subr.msk.mxu0 %vm196_vm0, %v353_v9  ;;  %814 = vmatprep.subr.msk.mxu1 %vm196_vm0, %v449_v10  ;;  %s937_s25 = scalar_lea.vmem %s936_s20, 1024  ;;  %p938_p0 = scmp.lt.s32.totalorder %s708_s6, %s936_s20 }
  0x33   : > { %809 = vmatpush1.msk.msra.mxu0 %vm196_vm0, %v801_v5  ;;  %425 = vmatprep.mubr.f32.mxu0 %v1014_v0  ;;  %p933_p11 = pnand %p932_p8, %p1082_p9  ;;  %p939_p1 = scmp.lt.s32.totalorder %s937_s25, %s931_s19 }
  0x34   : > { %815 = vmatpush1.msk.msra.mxu1 %vm196_vm0, %v812_v6  ;;  %518 = vmatprep.mubr.f32.mxu1 %v1014_v0 }
  0x35   : > { %810 = vmatmul.mubr.msk.f32.vlgmr.msra.gmra.mxu0 %vm192_vm1, %v799_v14  ;;  %817 = vmatprep.subr.msk.mxu0 %vm196_vm0, %v526_v13  ;;  %p934_p12 = pneg %p933_p11  ;;  %p940_p2 = por %p939_p1, %p938_p0 }
  0x36   : > { %816 = vmatmul.mubr.msk.f32.vlgmr.msra.gmra.mxu1 %vm192_vm1, %v798_v7  ;;  %818 = vmatpush1.msk.msra.mxu0 %vm196_vm0, %v811_v11 }
  0x37   : > { %820 = vmatprep.subr.msk.mxu1 %vm196_vm0, %v603_v15  ;;  %595 = vmatprep.mubr.f32.mxu0 %v1014_v0  ;;  %p941_p3 = pnand %p940_p2, %p934_p12 }
  0x38   : > { %821 = vmatpush1.msk.msra.mxu1 %vm196_vm0, %v813_v12  ;;  %672 = vmatprep.mubr.f32.mxu1 %v1014_v0 }
  0x39   : > { %819 = vmatmul.mubr.msk.f32.vlgmr.msra.gmra.mxu0 %vm192_vm1, %v180_v8 }
  0x3a   : > { %822 = vmatmul.mubr.msk.f32.vlgmr.msra.gmra.mxu1 %vm192_vm1, %v799_v14 }
  0xf1   : > { %v267_v16 = vpop.f32.mrf.mxu0  ;;  %v347_v17 = vpop.f32.mrf.mxu1 }
  0xf2   : > { %v348_v20 = vadd.f32 %v347_v17, %v267_v16 }
  0xf3   : > { %v269_v18 = vpop.f32.mrf.mxu0  ;;  %v349_v19 = vpop.f32.mrf.mxu1 }
  0xf4   : > { %v350_v22 = vadd.f32 %v349_v19, %v269_v18 }
  0xf5   : > { %v427_v21 = vpop.f32.mrf.mxu0 }
  0xf6   : > { %v432_v23 = vadd.f32 %v427_v21, %v348_v20  ;;  %v520_v24 = vpop.f32.mrf.mxu1 }
  0xf7   : > { %v429_v25 = vpop.f32.mrf.mxu0 }
  0xf8   : > { %vm434_vm2 = vcmp.gt.f32.partialorder %v432_v23, 0.0  ;;  %v436_v26 = vmul.f32 0.01, %v432_v23  ;;  %v433_v27 = vadd.f32 %v429_v25, %v350_v22  ;;  %v522_v28 = vpop.f32.mrf.mxu1 }
  0xf9   : > { %v597_v29 = vpop.f32.mrf.mxu0 }
  0xfa   : > { %v438_v30 = vsel %vm434_vm2, %v432_v23, %v436_v26  ;;  %vm435_vm3 = vcmp.gt.f32.partialorder %v433_v27, 0.0  ;;  %v437_v31 = vmul.f32 0.01, %v433_v27  ;;  %v598_v32 = vadd.f32 %v597_v29, %v520_v24  ;;  %v674_v33 = vpop.f32.mrf.mxu1 }
  0xfb   : > { %440 = vst [vmem:[%s177_s4] sm:$0xff] %v438_v30  ;;  %v599_v34 = vpop.f32.mrf.mxu0 }
  0xfc   : > { %v439_v35 = vsel %vm435_vm3, %v433_v27, %v437_v31  ;;  %v679_v36 = vadd.f32 %v674_v33, %v598_v32  ;;  %v600_v37 = vadd.f32 %v599_v34, %v522_v28  ;;  %v676_v38 = vpop.f32.mrf.mxu1 }
  0xfd   : > { %441 = vst [vmem:[%s177_s4 + $0x8] sm:$0xff] %v439_v35 }
  0xfe   : > { %vm681_vm4 = vcmp.gt.f32.partialorder %v679_v36, 0.0  ;;  %v683_v39 = vmul.f32 0.01, %v679_v36  ;;  %v680_v40 = vadd.f32 %v676_v38, %v600_v37 }
 0x100   : > { %v685_v41 = vsel %vm681_vm4, %v679_v36, %v683_v39  ;;  %vm682_vm5 = vcmp.gt.f32.partialorder %v680_v40, 0.0  ;;  %v684_v42 = vmul.f32 0.01, %v680_v40 }
 0x101   : > { %823 = vst [vmem:[%s177_s4 + $0x10] sm:$0xff] %v685_v41 }
 0x102   : > { %v686_v43 = vsel %vm682_vm5, %v680_v40, %v684_v42 }
 0x103   : > { %824 = vst [vmem:[%s177_s4 + $0x18] sm:$0xff] %v686_v43 }
 0x104   : > { %944 = shalt.err (!%p941_p3)
}
 0x105   : > { %s945_s26 = scalar_lea.hbm %s1155_s15, 512  ;;  %s949_s28 = scalar_lea.hbm %s1199_s2, 1024 }
 0x106   : > { %p946_p5 = scmp.ne.s32.totalorder %s1155_s15, %s945_s26  ;;  %p950_p7 = scmp.lt.s32.totalorder %s1155_s15, %s1199_s2 }
 0x107   : > { %p951_p10 = scmp.lt.s32.totalorder %s949_s28, %s945_s26 }
 0x108   : > { %p947_p6 = pnand %p946_p5, %p1082_p9 }
 0x109   : > { %p952_p13 = por %p951_p10, %p950_p7 }
 0x10a   : > { %p948_p4 = pneg %p947_p6 }
 0x10c   : > { %p953_p8 = pnand %p952_p13, %p948_p4 }
 0x10e   : > { %956 = shalt.err (!%p953_p8)
}
 0x10f   : > { %836 = dma.vmem_to_hbm [thread:$0]  (%p1082_p9), %s708_s6, 512, %s1155_s15, %s691_s16  }
 0x110 PF: > { %s719_s30 = sand.u32 1, %s991_s9   ;;  %p1205_p11 = scmp.ne.s32.totalorder %s1203_s24, 0 }
 0x111   : > { %p1206_p12 = scmp.ge.s32.totalorder %s1011_s14, 2  ;;  %s720_s3 = scalar_lea.sflag [#allocation4], %s719_s30 }
 0x113   : > { %p843_p0 = pnand %p1206_p12, %p1205_p11 }
 0x115   : > { %p844_p1 = pneg %p843_p0 }
 0x117   : > { %986 = dma.done.wait (%p844_p1), %s720_s3, 512  }
 0x118   : > { %988 = vsyncadd (%p844_p1), %s720_s3, 4294966784  ;;  %s18_s14 = sadd.s32 1, %s1011_s14   ;;  %s1207_s9 = smov %s995_s10 }
 0x119   : > { %p15_p2 = scmp.ge.s32.totalorder %s18_s14, 4   ;;  %s1208_s10 = smov %s999_s11 }
 0x11a   : > { %s1209_s11 = smov %s1087_s23  ;;  %s1210_s12 = smov %s1007_s13 }
 0x11b   : > { %s1211_s13 = smov %s1213_s17  ;;  %17 = sbr.rel (!%p15_p2) target bundleno = 6 (0x6), region = 81 }
 0x120   :  { %725 = vsyncpa [#allocation3], 1 }
 0x121   :  { %727 = vsyncpa [#allocation3 + $0x1], 1 }
 0x122   :  { %728 = vsyncpa [#allocation4], 1 }
 0x123   :  { %730 = vsyncpa [#allocation4 + $0x1], 1 }

</bundles_post_ra>
